<compile_context>
chip_gen: v5e
topology: v5e:2x2
jax: 0.10.0
libtpu: 0.0.40
codegen_flags: <defaults>
</compile_context>

<pallas_src>
import jax
import jax.numpy as jnp
from jax.experimental import pallas as pl
from jax.experimental.pallas import tpu as pltpu  # noqa: F401  (TPU backend assumed)

LANE = 128  # TPU lane width: all channel dims are zero-padded to this.


# ----------------------------------------------------------------------------
# Padding helpers (host-side glue).
# ----------------------------------------------------------------------------
def _pad_last(a, cols):
    return jnp.pad(a, ((0, 0),) * (a.ndim - 1) + ((0, cols - a.shape[-1]),))


def _pad2(a, rows, cols):
    return jnp.pad(a, ((0, rows - a.shape[0]), (0, cols - a.shape[1])))


# ----------------------------------------------------------------------------
# Fused Pallas kernel: 3 x (SAGEConv mean-aggregation + lin_l/lin_r + PReLU).
#   a{i}  : [Nt_i, Ns_i] bf16  unnormalized neighbor counts
#   d{i}  : [Nt_i, 1]    f32   degrees (row sums of a{i})
#   x     : [Ns_1, 128]  bf16  padded input features
#   w{i}  : [256, 128]   bf16  concat([Wl; Wr]) padded
#   b{i}  : [1, 128]     f32   lin_l bias (padded)
#   p{i}  : [1, 128]     f32   PReLU alpha (padded)
#   out   : [Nt_3, 128]  f32
# ----------------------------------------------------------------------------
def _dgi_encoder_kernel(a1_ref, d1_ref, a2_ref, d2_ref, a3_ref, d3_ref,
                        x_ref,
                        w1_ref, b1_ref, p1_ref,
                        w2_ref, b2_ref, p2_ref,
                        w3_ref, b3_ref, p3_ref,
                        o_ref):
    def sage_prelu(a_ref, deg_ref, x_src, w_ref, b_ref, al_ref):
        n_tgt = a_ref.shape[0]
        # Mean aggregation: bf16 neighbor-count matmul on the MXU (f32 acc),
        # then 1/deg normalization in f32 on the EUP (approx reciprocal).
        agg = jnp.dot(a_ref[...], x_src.astype(jnp.bfloat16),
                      preferred_element_type=jnp.float32)
        inv_deg = pl.reciprocal(jnp.maximum(deg_ref[...], 1.0), approx=True)
        agg = agg * inv_deg                                   # [Nt, 128] f32
        # Merged lin_l/lin_r: [agg | x_target] @ [Wl ; Wr] -- one MXU push with
        # contraction depth 256; bias only on the lin_l path (matches SAGEConv
        # since the bias was kept separate host-side).
        xt = x_src[:n_tgt, :].astype(jnp.bfloat16)            # root features
        cat = jnp.concatenate([agg.astype(jnp.bfloat16), xt], axis=-1)
        h = jnp.dot(cat, w_ref[...], preferred_element_type=jnp.float32)
        h = h + b_ref[...]
        # Per-channel PReLU, f32 epilogue (v5e VPU/EUP have no native bf16).
        return jnp.where(h > 0.0, h, al_ref[...] * h)

    x0 = x_ref[...]                                           # bf16 [Ns1, 128]
    h1 = sage_prelu(a1_ref, d1_ref, x0, w1_ref, b1_ref, p1_ref)   # f32 [Nt1,128]
    h2 = sage_prelu(a2_ref, d2_ref, h1, w2_ref, b2_ref, p2_ref)   # f32 [Nt2,128]
    h3 = sage_prelu(a3_ref, d3_ref, h2, w3_ref, b3_ref, p3_ref)   # f32 [Nt3,128]
    o_ref[...] = h3.astype(o_ref.dtype)


# ----------------------------------------------------------------------------
# Encoder forward: single fused pallas_call over all three layers.
# adjs[i] = (edge_index, e_id, (n_src_i, n_tgt_i)); edge_index int32 [2, E].
# params[i] = (Wl [Cin,H], Wr [Cin,H], b [H], alpha [H])
# ----------------------------------------------------------------------------
def encoder_forward(x, adjs, params, *, hidden_channels):
    assert len(adjs) == 3 and len(params) == 3

    # ---- glue: dense neighbor-count matrices + degrees from edge_index ----
    counts_list, deg_list = [], []
    for (edge_index, _e_id, size) in adjs:
        n_src, n_tgt = size
        src, tgt = edge_index[0], edge_index[1]
        counts = jnp.zeros((n_tgt, n_src), jnp.float32).at[tgt, src].add(1.0)
        deg_list.append(counts.sum(axis=1, keepdims=True))       # [Nt, 1] f32
        counts_list.append(counts.astype(jnp.bfloat16))          # exact small ints

    # ---- pad channels to 128 lanes, merge Wl/Wr, cast matmul operands ----
    x_p = _pad_last(x, LANE).astype(jnp.bfloat16)                # [Ns1, 128]
    w_list, b_list, al_list = [], [], []
    for (Wl, Wr, b, alpha) in params:
        Wl_p = _pad2(Wl, LANE, LANE)
        Wr_p = _pad2(Wr, LANE, LANE)
        w_list.append(
            jnp.concatenate([Wl_p, Wr_p], axis=0).astype(jnp.bfloat16))  # [256,128]
        b_list.append(_pad_last(b.reshape(1, -1), LANE).astype(jnp.float32))
        al_list.append(_pad_last(alpha.reshape(1, -1), LANE).astype(jnp.float32))

    args = [counts_list[0], deg_list[0],
            counts_list[1], deg_list[1],
            counts_list[2], deg_list[2],
            x_p,
            w_list[0], b_list[0], al_list[0],
            w_list[1], b_list[1], al_list[1],
            w_list[2], b_list[2], al_list[2]]

    n_out = adjs[-1][2][1]

    def full_spec(shape):
        return pl.BlockSpec(shape, lambda: (0,) * len(shape))

    # Advisory cost estimate so XLA schedules the scatter glue around the call.
    flops = 0
    for c in counts_list:
        nt, ns = c.shape
        flops += 2 * nt * ns * LANE + 2 * nt * (2 * LANE) * LANE
    transcendentals = sum(c.shape[0] for c in counts_list)
    bytes_accessed = sum(int(a.size) * int(a.dtype.itemsize) for a in args)
    bytes_accessed += int(n_out) * LANE * 4
    cost = pl.CostEstimate(flops=int(flops),
                           transcendentals=int(transcendentals),
                           bytes_accessed=int(bytes_accessed))

    out_padded = pl.pallas_call(
        _dgi_encoder_kernel,
        out_shape=jax.ShapeDtypeStruct((n_out, LANE), jnp.float32),
        in_specs=[full_spec(a.shape) for a in args],
        out_specs=full_spec((n_out, LANE)),
        cost_estimate=cost,
    )(*args)

    # Drop the lane padding outside the kernel (keeps the in-kernel store
    # lane-dense).
    return out_padded[:, :hidden_channels]


# ----------------------------------------------------------------------------
# Deterministic parameter / input construction.
# ----------------------------------------------------------------------------
def make_params(key, in_channels, hidden_channels):
    params = []
    dims_in = [in_channels, hidden_channels, hidden_channels]
    for i in range(3):
        cin = dims_in[i]
        k1, k2, k3, key = jax.random.split(key, 4)
        scale = 1.0 / jnp.sqrt(jnp.float32(cin))
        Wl = jax.random.uniform(k1, (cin, hidden_channels), jnp.float32,
                                -scale, scale)
        Wr = jax.random.uniform(k2, (cin, hidden_channels), jnp.float32,
                                -scale, scale)
        b = jax.random.uniform(k3, (hidden_channels,), jnp.float32,
                               -scale, scale)
        alpha = jnp.full((hidden_channels,), 0.25, jnp.float32)  # PReLU init
        params.append((Wl, Wr, b, alpha))
    return params


def make_adjs(node_counts, fanout=3):
    """node_counts = [N0, N1, N2, N3]; layer i maps N_i sources -> N_{i+1} tgts."""
    adjs = []
    for i in range(3):
        n_src, n_tgt = node_counts[i], node_counts[i + 1]
        tgt = jnp.repeat(jnp.arange(n_tgt, dtype=jnp.int32), fanout)
        src = (tgt * 7 + jnp.tile(jnp.arange(fanout, dtype=jnp.int32), n_tgt)
               * 3 + 1) % n_src
        edge_index = jnp.stack([src, tgt], axis=0)
        adjs.append((edge_index, None, (n_src, n_tgt)))
    return adjs


if __name__ == "__main__":
    in_channels = 16
    hidden_channels = 32
    node_counts = [64, 32, 16, 8]   # neighborhood sizes per hop

    key = jax.random.PRNGKey(0)
    kx, kp = jax.random.split(key)
    x = jax.random.normal(kx, (node_counts[0], in_channels), jnp.float32)
    params = make_params(kp, in_channels, hidden_channels)
    adjs = make_adjs(node_counts)

    out = encoder_forward(x, adjs, params, hidden_channels=hidden_channels)
    out = jax.block_until_ready(out)
    assert out.shape == (node_counts[-1], hidden_channels)
    assert bool(jnp.all(jnp.isfinite(out)))
    print("KERNEL_OK")
</pallas_src>

<mosaic_0001>
module attributes {stable_mosaic.version = 11 : i64} {
  func.func @_dgi_encoder_kernel(%arg0: memref<32x64xbf16, #tpu.memory_space<vmem>>, %arg1: memref<32x1xf32, #tpu.memory_space<vmem>>, %arg2: memref<16x32xbf16, #tpu.memory_space<vmem>>, %arg3: memref<16x1xf32, #tpu.memory_space<vmem>>, %arg4: memref<8x16xbf16, #tpu.memory_space<vmem>>, %arg5: memref<8x1xf32, #tpu.memory_space<vmem>>, %arg6: memref<64x128xbf16, #tpu.memory_space<vmem>>, %arg7: memref<256x128xbf16, #tpu.memory_space<vmem>>, %arg8: memref<1x128xf32, #tpu.memory_space<vmem>>, %arg9: memref<1x128xf32, #tpu.memory_space<vmem>>, %arg10: memref<256x128xbf16, #tpu.memory_space<vmem>>, %arg11: memref<1x128xf32, #tpu.memory_space<vmem>>, %arg12: memref<1x128xf32, #tpu.memory_space<vmem>>, %arg13: memref<256x128xbf16, #tpu.memory_space<vmem>>, %arg14: memref<1x128xf32, #tpu.memory_space<vmem>>, %arg15: memref<1x128xf32, #tpu.memory_space<vmem>>, %arg16: memref<8x128xf32, #tpu.memory_space<vmem>>) attributes {dimension_semantics = [], scalar_prefetch = 0 : i64, scratch_operands = 0 : i64, tpu.core_type = #tpu.core_type<tc>} {
    %c0 = arith.constant 0 : index
    %c0_0 = arith.constant 0 : index
    %0 = vector.load %arg6[%c0, %c0_0] : memref<64x128xbf16, #tpu.memory_space<vmem>>, vector<64x128xbf16>
    %c0_1 = arith.constant 0 : index
    %c0_2 = arith.constant 0 : index
    %1 = vector.load %arg0[%c0_1, %c0_2] : memref<32x64xbf16, #tpu.memory_space<vmem>>, vector<32x64xbf16>
    %cst = arith.constant dense<0.000000e+00> : vector<32x128xf32>
    %2 = tpu.matmul %1, %0, %cst {dimension_numbers = #tpu.dot_dimension_numbers<[1], [0], [0], [1], [0, 0, 1, 1], [], []>} : vector<32x64xbf16>, vector<64x128xbf16>, vector<32x128xf32> -> vector<32x128xf32>
    %c0_3 = arith.constant 0 : index
    %c0_4 = arith.constant 0 : index
    %3 = vector.load %arg1[%c0_3, %c0_4] : memref<32x1xf32, #tpu.memory_space<vmem>>, vector<32x1xf32>
    %cst_5 = arith.constant 1.000000e+00 : f32
    %4 = vector.broadcast %cst_5 : f32 to vector<32x1xf32>
    %5 = arith.maximumf %3, %4 : vector<32x1xf32>
    %6 = tpu.reciprocal %5 {approx = true} : vector<32x1xf32> -> vector<32x1xf32>
    %7 = vector.broadcast %6 : vector<32x1xf32> to vector<32x128xf32>
    %8 = arith.mulf %2, %7 : vector<32x128xf32>
    %9 = vector.extract_strided_slice %0 {offsets = [0, 0], sizes = [32, 128], strides = [1, 1]} : vector<64x128xbf16> to vector<32x128xbf16>
    %10 = arith.truncf %8 : vector<32x128xf32> to vector<32x128xbf16>
    %11 = tpu.concatenate %10, %9 in 1 : vector<32x128xbf16>, vector<32x128xbf16> -> vector<32x256xbf16>
    %c0_6 = arith.constant 0 : index
    %c0_7 = arith.constant 0 : index
    %12 = vector.load %arg7[%c0_6, %c0_7] : memref<256x128xbf16, #tpu.memory_space<vmem>>, vector<256x128xbf16>
    %cst_8 = arith.constant dense<0.000000e+00> : vector<32x128xf32>
    %13 = tpu.matmul %11, %12, %cst_8 {dimension_numbers = #tpu.dot_dimension_numbers<[1], [0], [0], [1], [0, 0, 1, 1], [], []>} : vector<32x256xbf16>, vector<256x128xbf16>, vector<32x128xf32> -> vector<32x128xf32>
    %c0_9 = arith.constant 0 : index
    %c0_10 = arith.constant 0 : index
    %14 = vector.load %arg8[%c0_9, %c0_10] : memref<1x128xf32, #tpu.memory_space<vmem>>, vector<1x128xf32>
    %15 = vector.broadcast %14 : vector<1x128xf32> to vector<32x128xf32>
    %16 = arith.addf %13, %15 : vector<32x128xf32>
    %cst_11 = arith.constant 0.000000e+00 : f32
    %17 = vector.broadcast %cst_11 : f32 to vector<32x128xf32>
    %18 = arith.cmpf ogt, %16, %17 : vector<32x128xf32>
    %c0_12 = arith.constant 0 : index
    %c0_13 = arith.constant 0 : index
    %19 = vector.load %arg9[%c0_12, %c0_13] : memref<1x128xf32, #tpu.memory_space<vmem>>, vector<1x128xf32>
    %20 = vector.broadcast %19 : vector<1x128xf32> to vector<32x128xf32>
    %21 = arith.mulf %20, %16 : vector<32x128xf32>
    %22 = arith.select %18, %16, %21 : vector<32x128xi1>, vector<32x128xf32>
    %c0_14 = arith.constant 0 : index
    %c0_15 = arith.constant 0 : index
    %23 = vector.load %arg2[%c0_14, %c0_15] : memref<16x32xbf16, #tpu.memory_space<vmem>>, vector<16x32xbf16>
    %24 = arith.truncf %22 : vector<32x128xf32> to vector<32x128xbf16>
    %cst_16 = arith.constant dense<0.000000e+00> : vector<16x128xf32>
    %25 = tpu.matmul %23, %24, %cst_16 {dimension_numbers = #tpu.dot_dimension_numbers<[1], [0], [0], [1], [0, 0, 1, 1], [], []>} : vector<16x32xbf16>, vector<32x128xbf16>, vector<16x128xf32> -> vector<16x128xf32>
    %c0_17 = arith.constant 0 : index
    %c0_18 = arith.constant 0 : index
    %26 = vector.load %arg3[%c0_17, %c0_18] : memref<16x1xf32, #tpu.memory_space<vmem>>, vector<16x1xf32>
    %cst_19 = arith.constant 1.000000e+00 : f32
    %27 = vector.broadcast %cst_19 : f32 to vector<16x1xf32>
    %28 = arith.maximumf %26, %27 : vector<16x1xf32>
    %29 = tpu.reciprocal %28 {approx = true} : vector<16x1xf32> -> vector<16x1xf32>
    %30 = vector.broadcast %29 : vector<16x1xf32> to vector<16x128xf32>
    %31 = arith.mulf %25, %30 : vector<16x128xf32>
    %32 = vector.extract_strided_slice %22 {offsets = [0, 0], sizes = [16, 128], strides = [1, 1]} : vector<32x128xf32> to vector<16x128xf32>
    %33 = arith.truncf %32 : vector<16x128xf32> to vector<16x128xbf16>
    %34 = arith.truncf %31 : vector<16x128xf32> to vector<16x128xbf16>
    %35 = tpu.concatenate %34, %33 in 1 : vector<16x128xbf16>, vector<16x128xbf16> -> vector<16x256xbf16>
    %c0_20 = arith.constant 0 : index
    %c0_21 = arith.constant 0 : index
    %36 = vector.load %arg10[%c0_20, %c0_21] : memref<256x128xbf16, #tpu.memory_space<vmem>>, vector<256x128xbf16>
    %cst_22 = arith.constant dense<0.000000e+00> : vector<16x128xf32>
    %37 = tpu.matmul %35, %36, %cst_22 {dimension_numbers = #tpu.dot_dimension_numbers<[1], [0], [0], [1], [0, 0, 1, 1], [], []>} : vector<16x256xbf16>, vector<256x128xbf16>, vector<16x128xf32> -> vector<16x128xf32>
    %c0_23 = arith.constant 0 : index
    %c0_24 = arith.constant 0 : index
    %38 = vector.load %arg11[%c0_23, %c0_24] : memref<1x128xf32, #tpu.memory_space<vmem>>, vector<1x128xf32>
    %39 = vector.broadcast %38 : vector<1x128xf32> to vector<16x128xf32>
    %40 = arith.addf %37, %39 : vector<16x128xf32>
    %cst_25 = arith.constant 0.000000e+00 : f32
    %41 = vector.broadcast %cst_25 : f32 to vector<16x128xf32>
    %42 = arith.cmpf ogt, %40, %41 : vector<16x128xf32>
    %c0_26 = arith.constant 0 : index
    %c0_27 = arith.constant 0 : index
    %43 = vector.load %arg12[%c0_26, %c0_27] : memref<1x128xf32, #tpu.memory_space<vmem>>, vector<1x128xf32>
    %44 = vector.broadcast %43 : vector<1x128xf32> to vector<16x128xf32>
    %45 = arith.mulf %44, %40 : vector<16x128xf32>
    %46 = arith.select %42, %40, %45 : vector<16x128xi1>, vector<16x128xf32>
    %c0_28 = arith.constant 0 : index
    %c0_29 = arith.constant 0 : index
    %47 = vector.load %arg4[%c0_28, %c0_29] : memref<8x16xbf16, #tpu.memory_space<vmem>>, vector<8x16xbf16>
    %48 = arith.truncf %46 : vector<16x128xf32> to vector<16x128xbf16>
    %cst_30 = arith.constant dense<0.000000e+00> : vector<8x128xf32>
    %49 = tpu.matmul %47, %48, %cst_30 {dimension_numbers = #tpu.dot_dimension_numbers<[1], [0], [0], [1], [0, 0, 1, 1], [], []>} : vector<8x16xbf16>, vector<16x128xbf16>, vector<8x128xf32> -> vector<8x128xf32>
    %c0_31 = arith.constant 0 : index
    %c0_32 = arith.constant 0 : index
    %50 = vector.load %arg5[%c0_31, %c0_32] : memref<8x1xf32, #tpu.memory_space<vmem>>, vector<8x1xf32>
    %cst_33 = arith.constant 1.000000e+00 : f32
    %51 = vector.broadcast %cst_33 : f32 to vector<8x1xf32>
    %52 = arith.maximumf %50, %51 : vector<8x1xf32>
    %53 = tpu.reciprocal %52 {approx = true} : vector<8x1xf32> -> vector<8x1xf32>
    %54 = vector.broadcast %53 : vector<8x1xf32> to vector<8x128xf32>
    %55 = arith.mulf %49, %54 : vector<8x128xf32>
    %56 = vector.extract_strided_slice %46 {offsets = [0, 0], sizes = [8, 128], strides = [1, 1]} : vector<16x128xf32> to vector<8x128xf32>
    %57 = arith.truncf %56 : vector<8x128xf32> to vector<8x128xbf16>
    %58 = arith.truncf %55 : vector<8x128xf32> to vector<8x128xbf16>
    %59 = tpu.concatenate %58, %57 in 1 : vector<8x128xbf16>, vector<8x128xbf16> -> vector<8x256xbf16>
    %c0_34 = arith.constant 0 : index
    %c0_35 = arith.constant 0 : index
    %60 = vector.load %arg13[%c0_34, %c0_35] : memref<256x128xbf16, #tpu.memory_space<vmem>>, vector<256x128xbf16>
    %cst_36 = arith.constant dense<0.000000e+00> : vector<8x128xf32>
    %61 = tpu.matmul %59, %60, %cst_36 {dimension_numbers = #tpu.dot_dimension_numbers<[1], [0], [0], [1], [0, 0, 1, 1], [], []>} : vector<8x256xbf16>, vector<256x128xbf16>, vector<8x128xf32> -> vector<8x128xf32>
    %c0_37 = arith.constant 0 : index
    %c0_38 = arith.constant 0 : index
    %62 = vector.load %arg14[%c0_37, %c0_38] : memref<1x128xf32, #tpu.memory_space<vmem>>, vector<1x128xf32>
    %63 = vector.broadcast %62 : vector<1x128xf32> to vector<8x128xf32>
    %64 = arith.addf %61, %63 : vector<8x128xf32>
    %cst_39 = arith.constant 0.000000e+00 : f32
    %65 = vector.broadcast %cst_39 : f32 to vector<8x128xf32>
    %66 = arith.cmpf ogt, %64, %65 : vector<8x128xf32>
    %c0_40 = arith.constant 0 : index
    %c0_41 = arith.constant 0 : index
    %67 = vector.load %arg15[%c0_40, %c0_41] : memref<1x128xf32, #tpu.memory_space<vmem>>, vector<1x128xf32>
    %68 = vector.broadcast %67 : vector<1x128xf32> to vector<8x128xf32>
    %69 = arith.mulf %68, %64 : vector<8x128xf32>
    %70 = arith.select %66, %64, %69 : vector<8x128xi1>, vector<8x128xf32>
    %c0_42 = arith.constant 0 : index
    %c0_43 = arith.constant 0 : index
    %71 = vector.load %arg16[%c0_42, %c0_43] : memref<8x128xf32, #tpu.memory_space<vmem>>, vector<8x128xf32>
    tpu.vector_store %arg16[%c0_42, %c0_43], %70 {strides = array<i32>} : memref<8x128xf32, #tpu.memory_space<vmem>>, vector<8x128xf32>,
    return
  }
}

</mosaic_0001>

<bundles_post_ra>
// kernel: tpu_custom_call.1
= control target key start
LH: loop header
LB: loop body
LE: loop exit
PB: predicated region body
PF: predicated region fallthrough
CT: control target
= control target key end

     0   :  { %s1435_s0 = inlined_call_operand.vmem [shape: bf16[32,64], index: 0, kind: input, shape index: {}]   ;;  %s1436_s1 = inlined_call_operand.vmem [shape: f32[32,1], index: 1, kind: input, shape index: {}]   ;;  %s1437_s2 = inlined_call_operand.vmem [shape: bf16[16,32], index: 2, kind: input, shape index: {}]   ;;  %s1438_s3 = inlined_call_operand.vmem [shape: f32[16,1], index: 3, kind: input, shape index: {}]   ;;  %s1439_s4 = inlined_call_operand.vmem [shape: bf16[8,16], index: 4, kind: input, shape index: {}]   ;;  %s1440_s5 = inlined_call_operand.vmem [shape: f32[8,1], index: 5, kind: input, shape index: {}]   ;;  %s1441_s6 = inlined_call_operand.vmem [shape: bf16[64,128], index: 6, kind: input, shape index: {}]   ;;  %s1442_s7 = inlined_call_operand.hbm [shape: bf16[256,128], index: 7, kind: input, shape index: {}]   ;;  %s1443_s8 = inlined_call_operand.vmem [shape: f32[1,128], index: 8, kind: input, shape index: {}]   ;;  %s1444_s9 = inlined_call_operand.vmem [shape: f32[1,128], index: 9, kind: input, shape index: {}]   ;;  %s1445_s10 = inlined_call_operand.hbm [shape: bf16[256,128], index: 10, kind: input, shape index: {}]   ;;  %s1446_s11 = inlined_call_operand.vmem [shape: f32[1,128], index: 11, kind: input, shape index: {}]   ;;  %s1447_s12 = inlined_call_operand.vmem [shape: f32[1,128], index: 12, kind: input, shape index: {}]   ;;  %s1448_s13 = inlined_call_operand.hbm [shape: bf16[256,128], index: 13, kind: input, shape index: {}]   ;;  %s1449_s14 = inlined_call_operand.vmem [shape: f32[1,128], index: 14, kind: input, shape index: {}]   ;;  %s1450_s15 = inlined_call_operand.vmem [shape: f32[1,128], index: 15, kind: input, shape index: {}]   ;;  %s1451_s16 = inlined_call_operand.hbm [shape: f32[8,128], index: 16, kind: output, shape index: {}]  }
   0x1   :  { %1453 = sst [smem:[#allocation12_spill]] %s1435_s0 }
   0x2   :  { %21 = vsyncpa [#allocation3], 0 }
   0x3   :  { %22 = vsyncpa [#allocation6], 0 }
   0x4   :  { %23 = vsyncpa [#allocation4], 0  ;;  %s59_s23 = sshll.u32 %s1445_s10, 4  ;;  %s1268_s24 = smov [#allocation5]   ;;  %s60_s23 = int_to_ptr.hbm [resolvable:$true] %s59_s23 }
   0x5   :  { %s61_s25 = sshll.u32 %s1268_s24, 4  ;;  %s42_s28 = sshll.u32 %s1442_s7, 4  ;;  %s62_s25 = int_to_ptr.vmem [resolvable:$true] %s61_s25  ;;  %s43_s28 = int_to_ptr.hbm [resolvable:$true] %s42_s28 }
   0x6   :  { %s1269_s29 = smov 64   ;;  %s1270_s30 = smov 4  }
   0x7   :  { %67 = dma.hbm_to_vmem [thread:$0]  %s60_s23, 2048, %s62_s25, [#allocation6], %s1269_s29, %s1269_s29, %s1270_s30  }
   0x8   :  { %s1271_s0 = smov [#allocation2]   ;;  %s76_s20 = sshll.u32 %s1448_s13, 4  ;;  %s77_s20 = int_to_ptr.hbm [resolvable:$true] %s76_s20 }
   0x9   :  { %s44_s17 = sshll.u32 %s1271_s0, 4  ;;  %s1272_s10 = smov [#allocation7]   ;;  %s45_s17 = int_to_ptr.vmem [resolvable:$true] %s44_s17 }
   0xa   :  { %50 = dma.hbm_to_vmem [thread:$0]  %s43_s28, 2048, %s45_s17, [#allocation3], %s1269_s29, %s1269_s29, %s1270_s30  }
   0xb   :  { %s78_s21 = sshll.u32 %s1272_s10, 4  ;;  %s79_s21 = int_to_ptr.vmem [resolvable:$true] %s78_s21 }
   0xc   :  { %84 = dma.hbm_to_vmem [thread:$0]  %s77_s20, 2048, %s79_s21, [#allocation6], %s1269_s29, %s1269_s29, %s1270_s30  }
   0xd   :  { %1262 = dma.done.wait [#allocation3], 2048  }
   0xe   :  { %1263 = vsyncadd [#allocation3], 4294965248 }
   0xf   :  { %1264 = dma.done.wait [#allocation6], 4096  }
  0x10   :  { %1265 = vsyncadd [#allocation6], 4294963200  ;;  %v1273_v0 = vmov 0   ;;  %v1084_v1 = vld [vmem:[%s1441_s6 + $0x18] sm:$0xff]  ;;  %v174_v2 = vld [vmem:[%s1436_s1] sm:$0xff]  ;;  %vm148_vm0 = vcmask 523264  }
  0x11   :  { %1143 = vset.pattern.permute.xlu0 %v1273_v0  ;;  %1144 = vset.pattern.permute.xlu1 %v1273_v0  ;;  %v1083_v3 = vld [vmem:[%s1441_s6 + $0x10] sm:$0xff]  ;;  %v178_v4 = vmax.f32 %v174_v2, 1.0  ;;  %v175_v5 = vld [vmem:[%s1436_s1 + $0x8] sm:$0xff]  ;;  %v1102_v7 = vld [vmem:[#allocation2 + $0x78] sm:$0xff]  ;;  %vm421_vm5 = vcmask 261120   ;;  %vm645_vm8 = vcmask 130048  }
  0x12   :  { %1145 = vset.pattern.permute.xlu2 %v1273_v0  ;;  %159 = vmatpush.bf16.msra.mxu0 %v1084_v1  ;;  %v176_v6 = vld [vmem:[%s1436_s1 + $0x10] sm:$0xff]  ;;  %v1082_v8 = vld [vmem:[%s1441_s6 + $0x8] sm:$0xff]  ;;  %v179_v11 = vmax.f32 %v175_v5, 1.0  ;;  %v177_v12 = vld [vmem:[%s1436_s1 + $0x18] sm:$0xff]  ;;  %s1454_s1 = sld [smem:[#allocation12_spill]]  ;;  %s1274_s20 = smov [#allocation8]  }
  0x13   :  { %1152 = vrcp.f32 %v178_v4  ;;  %v180_v9 = vmax.f32 %v176_v6, 1.0  ;;  %v1101_v10 = vld [vmem:[#allocation2 + $0x70] sm:$0xff]  ;;  %377 = vmatpush.bf16.msra.mxu2 %v1102_v7  ;;  %v181_v13 = vmax.f32 %v177_v12, 1.0  ;;  %v1100_v14 = vld [vmem:[#allocation2 + $0x68] sm:$0xff]  ;;  %v1081_v16 = vld [vmem:[%s1441_s6] sm:$0xff]  ;;  %s844_s10 = sshll.u32 %s1274_s20, 4  ;;  %s845_s10 = int_to_ptr.vmem [resolvable:$true] %s844_s10 }
  0x14   :  { %v662_v17 = vld [vmem:[%s1440_s5] sm:$0xff]  ;;  %v1094_v25 = vld [vmem:[#allocation2 + $0x38] sm:$0xff]  ;;  %v1093_v27 = vld [vmem:[#allocation2 + $0x30] sm:$0xff]  ;;  %s846_s22 = sshll.u32 %s1451_s16, 4  ;;  %s847_s22 = int_to_ptr.hbm [resolvable:$true] %s846_s22 }
  0x15   :  { %1154 = vrcp.f32 %v180_v9  ;;  %v663_v20 = vmax.f32 %v662_v17, 1.0  ;;  %v1099_v26 = vld [vmem:[#allocation2 + $0x60] sm:$0xff]  ;;  %358 = vmatpush.bf16.msra.mxu1 %v1094_v25  ;;  %v1098_v28 = vld [vmem:[#allocation2 + $0x58] sm:$0xff]  ;;  %v1092_v29 = vld [vmem:[#allocation2 + $0x28] sm:$0xff] }
  0x16   :  { %160 = vmatpush.bf16.msra.mxu0 %v1083_v3  ;;  %1156 = vrcp.f32 %v179_v11  ;;  %v1097_v30 = vld [vmem:[#allocation2 + $0x50] sm:$0xff]  ;;  %v1091_v31 = vld [vmem:[#allocation2 + $0x20] sm:$0xff]  ;;  %v1096_v32 = vld [vmem:[#allocation2 + $0x48] sm:$0xff] }
  0x17   :  { %378 = vmatpush.bf16.msra.mxu2 %v1101_v10  ;;  %1158 = vrcp.f32 %v181_v13  ;;  %v1090_v33 = vld [vmem:[#allocation2 + $0x18] sm:$0xff]  ;;  %v1095_v34 = vld [vmem:[#allocation2 + $0x40] sm:$0xff]  ;;  %v1089_v35 = vld [vmem:[#allocation2 + $0x10] sm:$0xff] }
  0x18   :  { %v1085_v19 = vld [vmem:[%s1454_s1] sm:$0xff]  ;;  %1160 = vrcp.f32 %v663_v20  ;;  %v1086_v24 = vld [vmem:[%s1454_s1 + $0x8] sm:$0xff]  ;;  %v1119_v40 = vld [vmem:[#allocation5 + $0x78] sm:$0xff] }
  0x19   :  { %v1153_v15 = vpop.eup %1152  ;;  %359 = vmatpush.bf16.msra.mxu1 %v1093_v27  ;;  %v1088_v36 = vld [vmem:[#allocation2 + $0x8] sm:$0xff]  ;;  %v1087_v37 = vld [vmem:[#allocation2] sm:$0xff]  ;;  %v1118_v61 = vld [vmem:[#allocation5 + $0x70] sm:$0xff] }
  0x1a   :  { %161 = vmatpush.bf16.msra.mxu0 %v1082_v8  ;;  %188 = vperm.xlu0 %1143, %v1153_v15   ;;  %v1117_v62 = vld [vmem:[#allocation5 + $0x68] sm:$0xff]  ;;  %v1116_v63 = vld [vmem:[#allocation5 + $0x60] sm:$0xff]  ;;  %v1115_v0 = vld [vmem:[#allocation5 + $0x58] sm:$0xff] }
  0x1b   :  { %v1155_v18 = vpop.eup %1154  ;;  %379 = vmatpush.bf16.msra.mxu2 %v1100_v14  ;;  %v1114_v1 = vld [vmem:[#allocation5 + $0x50] sm:$0xff]  ;;  %v1113_v2 = vld [vmem:[#allocation5 + $0x48] sm:$0xff]  ;;  %v1112_v3 = vld [vmem:[#allocation5 + $0x40] sm:$0xff] }
  0x1c   :  { %198 = vperm.xlu1 %1144, %v1155_v18   ;;  %v1157_v21 = vpop.eup %1156  ;;  %v1146_v5 = vld [vmem:[%s1443_s8] ss:$0 sm:$0xff]  ;;  %v440_v18 = vld [vmem:[%s1438_s3 + $0x8] sm:$0xff] }
  0x1d   :  { %v1159_v22 = vpop.eup %1158  ;;  %360 = vmatpush.bf16.msra.mxu1 %v1092_v29  ;;  %v1147_v9 = vld [vmem:[%s1444_s9] ss:$0 sm:$0xff] }
  0x1e   :  { %162 = vmatpush.bf16.msra.mxu0 %v1081_v16  ;;  %v1161_v23 = vpop.eup %1160  ;;  %v439_v14 = vld [vmem:[%s1438_s3] sm:$0xff] }
  0x1f   :  { %380 = vmatpush.bf16.msra.mxu2 %v1099_v26  ;;  %v441_v15 = vmax.f32 %v439_v14, 1.0 }
  0x21   :  { %881 = vmatmul.msk.bf16.vlgmr.msra.gmra.mxu0 %vm148_vm0, %v1085_v19  ;;  %361 = vmatpush.bf16.msra.mxu1 %v1091_v31  ;;  %1162 = vrcp.f32 %v441_v15  ;;  %v1149_v15 = vld [vmem:[%s1447_s12] ss:$0 sm:$0xff] }
  0x22   :  { %193 = vperm.xlu0 %1143, %v1157_v21   ;;  %619 = vmatpush.bf16.msrb.mxu0 %v1119_v40  ;;  %v442_v21 = vmax.f32 %v440_v18, 1.0 }
  0x23   :  { %381 = vmatpush.bf16.msra.mxu2 %v1098_v28 }
  0x24   :  { %203 = vperm.xlu1 %1144, %v1159_v22   ;;  %1164 = vrcp.f32 %v442_v21 }
  0x25   :  { %362 = vmatpush.bf16.msra.mxu1 %v1090_v33 }
  0x26   :  { %620 = vmatpush.bf16.msrb.mxu0 %v1118_v61 }
  0x27   :  { %382 = vmatpush.bf16.msra.mxu2 %v1097_v30  ;;  %v1163_v26 = vpop.eup %1162 }
  0x28   :  { %447 = vperm.xlu2 %1145, %v1163_v26  }
  0x29   :  { %363 = vmatpush.bf16.msra.mxu1 %v1089_v35 }
  0x2a   :  { %667 = vperm.xlu0 %1143, %v1161_v23   ;;  %621 = vmatpush.bf16.msrb.mxu0 %v1117_v62 }
  0x2b   :  { %383 = vmatpush.bf16.msra.mxu2 %v1096_v32  ;;  %v1165_v32 = vpop.eup %1164 }
  0x2d   :  { %364 = vmatpush.bf16.msra.mxu1 %v1088_v36 }
  0x2e   :  { %622 = vmatpush.bf16.msrb.mxu0 %v1116_v63 }
  0x2f   :  { %384 = vmatpush.bf16.msra.mxu2 %v1095_v34 }
  0x30   :  { %452 = vperm.xlu2 %1145, %v1165_v32  }
  0x31   :  { %882 = vmatmul.msk.bf16.gmra.mxu0 %vm148_vm0, %v1086_v24  ;;  %365 = vmatpush.bf16.msra.mxu1 %v1087_v37 }
  0x32   :  { %385 = vmatmul.bf16.vlgmr.msra.gmra.mxu2 %v1081_v16  ;;  %623 = vmatpush.bf16.msrb.mxu0 %v1115_v0 }
  0x36   :  { %624 = vmatpush.bf16.msrb.mxu0 %v1114_v1 }
  0x3a   :  { %625 = vmatpush.bf16.msrb.mxu0 %v1113_v2 }
  0x3e   :  { %626 = vmatpush.bf16.msrb.mxu0 %v1112_v3 }
  0x42   :  { %390 = vmatmul.bf16.gmra.mxu2 %v1082_v8 }
  0x8c   :  { %v189_v38 = vpop.permute.xlu0 %188 }
  0x8e   :  { %v199_v49 = vpop.permute.xlu1 %198 }
  0x94   :  { %v194_v42 = vpop.permute.xlu0 %193 }
  0x96   :  { %v204_v53 = vpop.permute.xlu1 %203 }
  0x9e   :  { %v164_v39 = vpop.f32.mrf.mxu0 }
  0x9f   :  { %v206_v41 = vmul.f32 %v189_v38, %v164_v39 }
  0xa1   :  { %v210_v44 = vpack.c.bf16 %v206_v41, %v206_v41 }
  0xa3   :  { %v218_v47 = vunpack.c.l.b16 %v210_v44  ;;  %v1111_v44 = vld [vmem:[#allocation5 + $0x38] sm:$0xff] }
  0xa6   :  { %v166_v43 = vpop.f32.mrf.mxu0 }
  0xa7   :  { %v207_v45 = vmul.f32 %v194_v42, %v166_v43  ;;  %v1103_v43 = vld [vmem:[%s1437_s2] sm:$0xff] }
  0xa9   :  { %v211_v46 = vpack.c.bf16 %v207_v45, %v207_v45  ;;  %v1110_v45 = vld [vmem:[#allocation5 + $0x30] sm:$0xff] }
  0xab   :  { %v219_v48 = vunpack.c.l.b16 %v211_v46  ;;  %v1109_v46 = vld [vmem:[#allocation5 + $0x28] sm:$0xff] }
  0xad   :  { %v222_v50 = vpack.c.b16 %v219_v48, %v218_v47  ;;  %v1108_v47 = vld [vmem:[#allocation5 + $0x20] sm:$0xff]  ;;  %v1107_v48 = vld [vmem:[#allocation5 + $0x18] sm:$0xff] }
  0xae   :  { %v169_v51 = vpop.f32.mrf.mxu0 }
  0xaf   :  { %366 = vmatmul.bf16.vlgmr.msra.gmra.mxu1 %v222_v50  ;;  %v208_v52 = vmul.f32 %v199_v49, %v169_v51  ;;  %v1106_v49 = vld [vmem:[#allocation5 + $0x10] sm:$0xff]  ;;  %v1105_v50 = vld [vmem:[#allocation5 + $0x8] sm:$0xff]  ;;  %v1104_v51 = vld [vmem:[#allocation5] sm:$0xff] }
  0xb1   :  { %v212_v55 = vpack.c.bf16 %v208_v52, %v208_v52  ;;  %v1135_v52 = vld [vmem:[#allocation7 + $0x78] sm:$0xff] }
  0xb2   :  { %818 = vmatpush.bf16.msrb.mxu2 %v1135_v52 }
  0xb3   :  { %v220_v58 = vunpack.c.l.b16 %v212_v55  ;;  %v1132_v55 = vld [vmem:[#allocation7 + $0x60] sm:$0xff] }
  0xb5   :  { %v386_v4 = vpop.f32.mrf.mxu2 }
  0xb6   :  { %v171_v54 = vpop.f32.mrf.mxu0 }
  0xb7   :  { %v209_v56 = vmul.f32 %v204_v53, %v171_v54  ;;  %v1134_v53 = vld [vmem:[#allocation7 + $0x70] sm:$0xff]  ;;  %v1133_v54 = vld [vmem:[#allocation7 + $0x68] sm:$0xff] }
  0xb8   :  { %819 = vmatpush.bf16.msrb.mxu2 %v1134_v53 }
  0xb9   :  { %v213_v57 = vpack.c.bf16 %v209_v56, %v209_v56  ;;  %v448_v56 = vpop.permute.xlu2 %447 }
  0xbb   :  { %v221_v59 = vunpack.c.l.b16 %v213_v57  ;;  %v1131_v57 = vld [vmem:[#allocation7 + $0x58] sm:$0xff] }
  0xbc   :  { %820 = vmatpush.bf16.msrb.mxu2 %v1133_v54 }
  0xbd   :  { %v223_v60 = vpack.c.b16 %v221_v59, %v220_v58  ;;  %v388_v10 = vpop.f32.mrf.mxu2  ;;  %v1130_v59 = vld [vmem:[#allocation7 + $0x50] sm:$0xff] }
  0xbf   :  { %371 = vmatmul.bf16.gmra.mxu1 %v223_v60 }
  0xc0   :  { %821 = vmatpush.bf16.msrb.mxu2 %v1132_v55 }
  0xc1   :  { %v453_v61 = vpop.permute.xlu2 %452 }
  0xc4   :  { %822 = vmatpush.bf16.msrb.mxu2 %v1131_v57 }
  0xc5   :  { %v391_v23 = vpop.f32.mrf.mxu2 }
  0xc8   :  { %823 = vmatpush.bf16.msrb.mxu2 %v1130_v59 }
  0xcd   :  { %v393_v35 = vpop.f32.mrf.mxu2 }
 0x12c   :  { %v367_v6 = vpop.f32.mrf.mxu1 }
 0x12d   :  { %v368_v7 = vadd.f32 %v1146_v5, %v367_v6  ;;  %v1128_v6 = vld [vmem:[#allocation7 + $0x40] sm:$0xff] }
 0x12f   :  { %v387_v8 = vadd.f32 %v386_v4, %v368_v7  ;;  %v1127_v7 = vld [vmem:[#allocation7 + $0x38] sm:$0xff] }
 0x130   :  { %805 = vmatpush.bf16.msrb.mxu1 %v1127_v7 }
 0x131   :  { %v404_v11 = vmul.f32 %v1147_v9, %v387_v8  ;;  %vm396_vm1 = vcmp.gt.f32.partialorder %v387_v8, 0.0 }
 0x133   :  { %v408_v16 = vsel %vm396_vm1, %v387_v8, %v404_v11  ;;  %v1126_v8 = vld [vmem:[#allocation7 + $0x30] sm:$0xff]  ;;  %v1124_v11 = vld [vmem:[#allocation7 + $0x20] sm:$0xff] }
 0x134   :  { %v369_v12 = vpop.f32.mrf.mxu1  ;;  %v457_v20 = vpack.c.bf16 %v408_v16, %v408_v16  ;;  %806 = vmatpush.bf16.msrb.mxu1 %v1126_v8 }
 0x135   :  { %v370_v13 = vadd.f32 %v1146_v5, %v369_v12 }
 0x136   :  { %v469_v27 = vunpack.c.l.b16 %v457_v20 }
 0x137   :  { %v389_v17 = vadd.f32 %v388_v10, %v370_v13  ;;  %v1148_v10 = vld [vmem:[%s1446_s11] ss:$0 sm:$0xff] }
 0x139   :  { %vm397_vm2 = vcmp.gt.f32.partialorder %v389_v17, 0.0  ;;  %v405_v19 = vmul.f32 %v1147_v9, %v389_v17 }
 0x13b   :  { %v409_v22 = vsel %vm397_vm2, %v389_v17, %v405_v19 }
 0x13c   :  { %v372_v24 = vpop.f32.mrf.mxu1  ;;  %v458_v25 = vpack.c.bf16 %v409_v22, %v409_v22  ;;  %v414_v42 = vpack.c.bf16 %v409_v22, %v408_v16 }
 0x13d   :  { %v373_v29 = vadd.f32 %v1146_v5, %v372_v24 }
 0x13e   :  { %v470_v28 = vunpack.c.l.b16 %v458_v25 }
 0x13f   :  { %v392_v31 = vadd.f32 %v391_v23, %v373_v29  ;;  %v1122_v29 = vld [vmem:[#allocation7 + $0x10] sm:$0xff] }
 0x140   :  { %v471_v30 = vpack.c.b16 %v470_v28, %v469_v27  ;;  %v643_v27 = vld [vmem:[%s1439_s4] sm:$0xf]  ;;  %v1123_v28 = vld [vmem:[#allocation7 + $0x18] sm:$0xff] }
 0x141   :  { %v406_v37 = vmul.f32 %v1147_v9, %v392_v31  ;;  %vm398_vm3 = vcmp.gt.f32.partialorder %v392_v31, 0.0 }
 0x142   :  { %627 = vmatmul.bf16.vlgmr.msrb.gmra.mxu0 %v471_v30  ;;  %v1121_v30 = vld [vmem:[#allocation7 + $0x8] sm:$0xff] }
 0x143   :  { %v410_v39 = vsel %vm398_vm3, %v392_v31, %v406_v37  ;;  %v1120_v31 = vld [vmem:[#allocation7] sm:$0xff] }
 0x144   :  { %v374_v33 = vpop.f32.mrf.mxu1 }
 0x145   :  { %v375_v34 = vadd.f32 %v1146_v5, %v374_v33  ;;  %v1129_v5 = vld [vmem:[#allocation7 + $0x48] sm:$0xff] }
 0x146   :  { %824 = vmatpush.bf16.msrb.mxu2 %v1129_v5 }
 0x147   :  { %v394_v36 = vadd.f32 %v393_v35, %v375_v34  ;;  %v668_v34 = vpop.permute.xlu0 %667 }
 0x149   :  { %vm399_vm4 = vcmp.gt.f32.partialorder %v394_v36, 0.0  ;;  %v407_v38 = vmul.f32 %v1147_v9, %v394_v36  ;;  %v1125_v9 = vld [vmem:[#allocation7 + $0x28] sm:$0xff] }
 0x14a   :  { %825 = vmatpush.bf16.msrb.mxu2 %v1128_v6  ;;  %807 = vmatpush.bf16.msrb.mxu1 %v1125_v9 }
 0x14b   :  { %v411_v40 = vsel %vm399_vm4, %v394_v36, %v407_v38 }
 0x14c   :  { %v415_v41 = vpack.c.bf16 %v411_v40, %v410_v39  ;;  %v1150_v39 = vld [vmem:[%s1449_s14] ss:$0 sm:$0xff] }
 0x14e   :  { %431 = vmatpush.bf16.msra.mxu3 %v415_v41  ;;  %808 = vmatpush.bf16.msrb.mxu1 %v1124_v11 }
 0x152   :  { %432 = vmatpush.bf16.msra.mxu3 %v414_v42  ;;  %809 = vmatpush.bf16.msrb.mxu1 %v1123_v28  ;;  %v1151_v42 = vld [vmem:[%s1450_s15] ss:$0 sm:$0xff] }
 0x155   :  { %951 = vmatmul.msk.bf16.vlgmr.msra.gmra.mxu3 %vm421_vm5, %v1103_v43 }
 0x156   :  { %605 = vmatpush.bf16.msrb.mxu3 %v1111_v44  ;;  %810 = vmatpush.bf16.msrb.mxu1 %v1122_v29 }
 0x15a   :  { %606 = vmatpush.bf16.msrb.mxu3 %v1110_v45  ;;  %811 = vmatpush.bf16.msrb.mxu1 %v1121_v30 }
 0x15e   :  { %607 = vmatpush.bf16.msrb.mxu3 %v1109_v46  ;;  %812 = vmatpush.bf16.msrb.mxu1 %v1120_v31 }
 0x162   :  { %608 = vmatpush.bf16.msrb.mxu3 %v1108_v47 }
 0x166   :  { %609 = vmatpush.bf16.msrb.mxu3 %v1107_v48 }
 0x16a   :  { %610 = vmatpush.bf16.msrb.mxu3 %v1106_v49 }
 0x16e   :  { %611 = vmatpush.bf16.msrb.mxu3 %v1105_v50 }
 0x172   :  { %612 = vmatpush.bf16.msrb.mxu3 %v1104_v51 }
 0x1bf   :  { %v628_v12 = vpop.f32.mrf.mxu0 }
 0x1c7   :  { %v630_v22 = vpop.f32.mrf.mxu0 }
 0x1d8   :  { %v434_v58 = vpop.f32.mrf.mxu3 }
 0x1d9   :  { %v455_v60 = vmul.f32 %v448_v56, %v434_v58 }
 0x1db   :  { %v459_v63 = vpack.c.bf16 %v455_v60, %v455_v60 }
 0x1dd   :  { %v463_v2 = vunpack.c.l.b16 %v459_v63 }
 0x1e0   :  { %v436_v62 = vpop.f32.mrf.mxu3 }
 0x1e1   :  { %v456_v0 = vmul.f32 %v453_v61, %v436_v62 }
 0x1e3   :  { %v460_v1 = vpack.c.bf16 %v456_v0, %v456_v0 }
 0x1e5   :  { %v464_v3 = vunpack.c.l.b16 %v460_v1 }
 0x1e7   :  { %v465_v4 = vpack.c.b16 %v464_v3, %v463_v2 }
 0x1e9   :  { %613 = vmatmul.bf16.vlgmr.msrb.gmra.mxu3 %v465_v4 }
 0x26c   :  { %v614_v13 = vpop.f32.mrf.mxu3 }
 0x26d   :  { %v615_v14 = vadd.f32 %v1148_v10, %v614_v13 }
 0x26f   :  { %v629_v16 = vadd.f32 %v628_v12, %v615_v14 }
 0x271   :  { %vm633_vm6 = vcmp.gt.f32.partialorder %v629_v16, 0.0  ;;  %v639_v17 = vmul.f32 %v1149_v15, %v629_v16 }
 0x273   :  { %v641_v18 = vsel %vm633_vm6, %v629_v16, %v639_v17 }
 0x274   :  { %v616_v19 = vpop.f32.mrf.mxu3  ;;  %v671_v20 = vpack.c.bf16 %v641_v18, %v641_v18 }
 0x275   :  { %v617_v21 = vadd.f32 %v1148_v10, %v616_v19 }
 0x276   :  { %826 = vmatmul.bf16.vlgmr.msrb.gmra.mxu2 %v671_v20 }
 0x277   :  { %v631_v23 = vadd.f32 %v630_v22, %v617_v21 }
 0x279   :  { %vm634_vm7 = vcmp.gt.f32.partialorder %v631_v23, 0.0  ;;  %v640_v24 = vmul.f32 %v1149_v15, %v631_v23 }
 0x27b   :  { %v642_v25 = vsel %vm634_vm7, %v631_v23, %v640_v24 }
 0x27c   :  { %v644_v26 = vpack.c.bf16 %v642_v25, %v641_v18 }
 0x27e   :  { %656 = vmatpush.bf16.msra.mxu3 %v644_v26 }
 0x281   :  { %1016 = vmatmul.msk.bf16.vlgmr.msra.gmra.mxu3 %vm645_vm8, %v643_v27 }
 0x2f9   :  { %v827_v32 = vpop.f32.mrf.mxu2 }
 0x301   :  { %v829_v33 = vpop.f32.mrf.mxu2 }
 0x304   :  { %v658_v35 = vpop.f32.mrf.mxu3 }
 0x305   :  { %v670_v36 = vmul.f32 %v668_v34, %v658_v35 }
 0x307   :  { %v672_v37 = vpack.c.bf16 %v670_v36, %v670_v36 }
 0x309   :  { %813 = vmatmul.bf16.vlgmr.msrb.gmra.mxu1 %v672_v37 }
 0x30c   :  { %v660_v38 = vpop.f32.mrf.mxu3 }
 0x386   :  { %v814_v40 = vpop.f32.mrf.mxu1 }
 0x387   :  { %v815_v41 = vadd.f32 %v1150_v39, %v814_v40 }
 0x389   :  { %v828_v43 = vadd.f32 %v827_v32, %v815_v41 }
 0x38b   :  { %v836_v44 = vmul.f32 %v1151_v42, %v828_v43  ;;  %vm831_vm9 = vcmp.gt.f32.partialorder %v828_v43, 0.0 }
 0x38d   :  { %v837_v45 = vsel %vm831_vm9, %v828_v43, %v836_v44 }
 0x38e   :  { %v816_v46 = vpop.f32.mrf.mxu1  ;;  %838 = vst [vmem:[#allocation8] sm:$0xff] %v837_v45 }
 0x38f   :  { %849 = dma.vmem_to_hbm [thread:$0]  %s845_s10, 128, %s847_s22, [#allocation4]  }
 0x390   :  { %1266 = dma.done.wait [#allocation4], 128  }
 0x391   :  { %1267 = vsyncadd [#allocation4], 4294967168 }
 0x392   :  { %854 = vsyncpa [#allocation3], 1 }
 0x393   :  { %855 = vsyncpa [#allocation6], 1 }
 0x394   :  { %856 = vsyncpa [#allocation4], 1 }

</bundles_post_ra>
